<compile_context>
chip_gen: v5e
topology: v5e:2x2
jax: 0.10.0
libtpu: 0.0.40
codegen_flags: <defaults>
</compile_context>

<pallas_src>
import functools

import numpy as np

import jax
import jax.numpy as jnp
from jax.experimental import pallas as pl
from jax.experimental.pallas import tpu as pltpu

LANE = 128


def _round_up(x, m):
    return (x + m - 1) // m * m


def _vmem_limit_bytes():
    # Derive the scoped-VMEM budget from the actual chip instead of hard-coding:
    # ~48 MiB on v7x (64 MiB physical), ~96 MiB on v5e/v6e (128 MiB physical).
    try:
        cap = int(pltpu.get_tpu_info().vmem_capacity_bytes)
    except Exception:
        cap = 64 * 1024 * 1024
    return min(cap * 3 // 4, 100 * 1024 * 1024)


def _pick_tm(n_pad):
    # At least two row tiles so the "parallel" axis can be split across
    # TensorCores (v7x megacore); otherwise as large as possible.
    cap = max(n_pad // 2, LANE)
    for c in (512, 256, 128):
        if c <= cap and n_pad % c == 0:
            return c
    return n_pad


def _pick_tk(n_pad):
    for c in (2048, 1024, 512, 256, 128):
        if n_pad % c == 0:
            return c
    return n_pad


def _pick_tp(n_pad):
    for c in (1024, 512, 256, 128):
        if n_pad % c == 0:
            return c
    return n_pad


# --------------------------------------------------------------------------
# Projection kernel:  XW[i] = (X[i] @ W) * d_inv_sqrt[i]   (row-tiled, W resident)
# The column half of the symmetric normalization is folded in here so the
# aggregation kernel can stream the exact integer adjacency.
# --------------------------------------------------------------------------
def _project_kernel(x_ref, w_ref, dinv_ref, o_ref):
    xw = jnp.dot(x_ref[...], w_ref[...], preferred_element_type=jnp.float32)
    o_ref[...] = (xw * dinv_ref[...]).astype(o_ref.dtype)


def _project(x_bf16, w_bf16, dinv, *, tp, vmem_limit):
    n_pad, c_in_pad = x_bf16.shape
    c_out_pad = w_bf16.shape[1]
    return pl.pallas_call(
        _project_kernel,
        out_shape=jax.ShapeDtypeStruct((n_pad, c_out_pad), jnp.bfloat16),
        grid_spec=pltpu.PrefetchScalarGridSpec(
            num_scalar_prefetch=0,
            grid=(n_pad // tp,),
            in_specs=[
                pl.BlockSpec((tp, c_in_pad), lambda i: (i, 0)),
                pl.BlockSpec((c_in_pad, c_out_pad), lambda i: (0, 0)),  # resident W
                pl.BlockSpec((tp, 1), lambda i: (i, 0)),                # d^-1/2 rows
            ],
            out_specs=pl.BlockSpec((tp, c_out_pad), lambda i: (i, 0)),
        ),
        compiler_params=pltpu.CompilerParams(
            dimension_semantics=("parallel",),
            vmem_limit_bytes=vmem_limit,
        ),
    )(x_bf16, w_bf16, dinv)


# --------------------------------------------------------------------------
# Aggregation kernel:
#   out[i] = act( d_inv_sqrt[i] * sum_{k in nonzero(i)} A_int[i,k] @ XW[k] + b )
# A_int streamed as int8 tiles through a scalar-prefetched nonzero-tile
# schedule; XW k-blocked through the same schedule; f32 VMEM accumulator.
# --------------------------------------------------------------------------
def _aggregate_kernel(ktab_ref, kcnt_ref, a_ref, xw_ref, dinv_ref, b_ref,
                      o_ref, acc_ref, *, apply_relu):
    i = pl.program_id(0)
    k = pl.program_id(1)

    @pl.when(k == 0)
    def _():
        acc_ref[...] = jnp.zeros_like(acc_ref)

    # Only accumulate real (nonzero) tiles; padded schedule steps repeat the
    # previous block index so their DMA is skipped, and this gate skips the MXU.
    @pl.when(k < kcnt_ref[i])
    def _():
        # int8 -> f32 -> bf16 is the conservatively-supported cast path; the
        # counts are small integers so the bf16 MXU pass is exact.
        a_bf16 = a_ref[...].astype(jnp.float32).astype(jnp.bfloat16)
        acc_ref[...] += jnp.dot(a_bf16, xw_ref[...],
                                preferred_element_type=jnp.float32)

    @pl.when(k == pl.num_programs(1) - 1)
    def _():
        out = acc_ref[...] * dinv_ref[...] + b_ref[...]
        if apply_relu:
            out = jnp.maximum(out, 0.0)
        o_ref[...] = out.astype(o_ref.dtype)


def _aggregate(a_i8, xw_bf16, dinv, b_pad, ktab, kcnt, max_nk, *,
               tm, tk, apply_relu, out_dtype, vmem_limit):
    n_pad = a_i8.shape[0]
    c_pad = xw_bf16.shape[1]
    grid = (n_pad // tm, max_nk)  # reduction (schedule) axis last

    n_steps = (n_pad // tm) * max_nk
    cost = pl.CostEstimate(
        flops=2 * n_steps * tm * tk * c_pad,
        transcendentals=0,
        bytes_accessed=int(n_steps * (tm * tk * 1 + tk * c_pad * 2)
                           + n_pad * c_pad * jnp.dtype(out_dtype).itemsize),
    )

    kernel = functools.partial(_aggregate_kernel, apply_relu=apply_relu)
    return pl.pallas_call(
        kernel,
        out_shape=jax.ShapeDtypeStruct((n_pad, c_pad), out_dtype),
        grid_spec=pltpu.PrefetchScalarGridSpec(
            num_scalar_prefetch=2,  # ktab, kcnt live in SMEM, feed the index_maps
            grid=grid,
            in_specs=[
                # A_int tile: data-dependent k-tile index from the schedule.
                pl.BlockSpec((tm, tk), lambda i, k, kt, kc: (i, kt[i, k])),
                # XW k-block: same schedule (no full-XW VMEM residency).
                pl.BlockSpec((tk, c_pad), lambda i, k, kt, kc: (kt[i, k], 0)),
                # Row scale d^-1/2 for this row tile.
                pl.BlockSpec((tm, 1), lambda i, k, kt, kc: (i, 0)),
                # Bias, resident.
                pl.BlockSpec((1, c_pad), lambda i, k, kt, kc: (0, 0)),
            ],
            out_specs=pl.BlockSpec((tm, c_pad), lambda i, k, kt, kc: (i, 0)),
            scratch_shapes=[pltpu.VMEM((tm, c_pad), jnp.float32)],
        ),
        compiler_params=pltpu.CompilerParams(
            dimension_semantics=("parallel", "arbitrary"),
            vmem_limit_bytes=vmem_limit,
        ),
        cost_estimate=cost,
    )(ktab, kcnt, a_i8, xw_bf16, dinv, b_pad)


# --------------------------------------------------------------------------
# Host-side tile-sparsity schedule (compacted list of nonzero k-tiles per row
# tile; padding repeats the last valid index so Pallas skips the re-DMA).
# --------------------------------------------------------------------------
def build_tile_schedule(a_int_padded, tm, tk):
    # Runs on host with concrete values (numpy); for a fully jitted pipeline the
    # schedule would have to be precomputed and passed in.
    a_np = np.asarray(a_int_padded)
    n_pad = a_np.shape[0]
    ni, nk = n_pad // tm, n_pad // tk
    blocks = a_np.reshape(ni, tm, nk, tk)
    nnz = (blocks != 0).any(axis=(1, 3))            # (ni, nk) bool
    counts = np.maximum(nnz.sum(axis=1), 1).astype(np.int32)
    max_nk = int(counts.max())
    ktab = np.zeros((ni, max_nk), dtype=np.int32)
    for i in range(ni):
        idx = np.nonzero(nnz[i])[0].astype(np.int32)
        if idx.size == 0:
            idx = np.array([0], dtype=np.int32)
        c = idx.size
        ktab[i, :c] = idx
        ktab[i, c:] = idx[-1]                       # repeat last -> DMA skipped
    return jnp.asarray(ktab), jnp.asarray(counts), max_nk


# --------------------------------------------------------------------------
# Full forward pass
# --------------------------------------------------------------------------
def gcn_link_predictor(x, a_counts, d_inv_sqrt, w1, b1, w2, b2, *,
                       tile_m=None, tile_k=None, tile_m_proj=None):
    """x: [N, C_in], a_counts: [N, N] integer-valued (A + I) counts,
    d_inv_sqrt: [N] with D = rowsum(A + I)."""
    n, c_in = x.shape
    c_out = w1.shape[1]

    n_pad = _round_up(max(n, 8), LANE)
    c_in_pad = _round_up(c_in, LANE)
    c_pad = _round_up(c_out, LANE)

    tm = tile_m or _pick_tm(n_pad)
    tk = tile_k or _pick_tk(n_pad)
    tp = tile_m_proj or _pick_tp(n_pad)
    assert n_pad % tm == 0 and n_pad % tk == 0 and n_pad % tp == 0

    vmem_limit = _vmem_limit_bytes()

    # Zero-pad everything to lane-dense shapes. Padding columns stay exactly
    # zero through both layers; padded rows are decoupled (zero A rows/cols and
    # zero d_inv_sqrt) and sliced off at the end.
    x_p = jnp.zeros((n_pad, c_in_pad), jnp.bfloat16).at[:n, :c_in].set(
        x.astype(jnp.bfloat16))
    a_p = jnp.zeros((n_pad, n_pad), jnp.int8).at[:n, :n].set(
        jnp.clip(a_counts, 0, 127).astype(jnp.int8))
    d_p = jnp.zeros((n_pad, 1), jnp.float32).at[:n, 0].set(
        d_inv_sqrt.astype(jnp.float32))
    w1_p = jnp.zeros((c_in_pad, c_pad), jnp.bfloat16).at[:c_in, :c_out].set(
        w1.astype(jnp.bfloat16))
    w2_p = jnp.zeros((c_pad, c_pad), jnp.bfloat16).at[:c_out, :c_out].set(
        w2.astype(jnp.bfloat16))
    b1_p = jnp.zeros((1, c_pad), jnp.float32).at[:, :c_out].set(
        b1.reshape(1, -1).astype(jnp.float32))
    b2_p = jnp.zeros((1, c_pad), jnp.float32).at[:, :c_out].set(
        b2.reshape(1, -1).astype(jnp.float32))

    ktab, kcnt, max_nk = build_tile_schedule(a_p, tm, tk)

    # Layer 1: H1 = relu(A_hat @ (X @ W1) + b1)
    xw1 = _project(x_p, w1_p, d_p, tp=tp, vmem_limit=vmem_limit)
    h1 = _aggregate(a_p, xw1, d_p, b1_p, ktab, kcnt, max_nk,
                    tm=tm, tk=tk, apply_relu=True,
                    out_dtype=jnp.bfloat16, vmem_limit=vmem_limit)
    # Layer 2: H2 = A_hat @ (H1 @ W2) + b2
    xw2 = _project(h1, w2_p, d_p, tp=tp, vmem_limit=vmem_limit)
    h2 = _aggregate(a_p, xw2, d_p, b2_p, ktab, kcnt, max_nk,
                    tm=tm, tk=tk, apply_relu=False,
                    out_dtype=jnp.float32, vmem_limit=vmem_limit)
    return h2[:n, :c_out]


# --------------------------------------------------------------------------
# Plain-JAX glue + references
# --------------------------------------------------------------------------
def adjacency_and_norm(edge_index, num_nodes):
    """(A + I) integer count matrix and d^{-1/2}, matching PyG gcn_norm:
    duplicate non-self edges accumulate; exactly one weight-1 self-loop/node."""
    # TODO(synk): the edge_index -> dense adjacency scatter stays in plain JAX.
    src, dst = edge_index[0], edge_index[1]
    w = (src != dst).astype(jnp.float32)  # drop self-loops from the edge list
    a = jnp.zeros((num_nodes, num_nodes), jnp.float32).at[dst, src].add(w)
    a = a + jnp.eye(num_nodes, dtype=jnp.float32)  # exactly one self-loop/node
    deg = a.sum(axis=1)
    d_inv_sqrt = jnp.where(deg > 0, 1.0 / jnp.sqrt(deg), 0.0)
    return a, d_inv_sqrt


def glorot(key, shape):
    fan_in, fan_out = shape
    limit = jnp.sqrt(6.0 / (fan_in + fan_out))
    return jax.random.uniform(key, shape, jnp.float32, -limit, limit)


def reference_forward(x, a_hat, w1, b1, w2, b2):
    h1 = jnp.maximum(a_hat @ (x @ w1) + b1[None, :], 0.0)
    return a_hat @ (h1 @ w2) + b2[None, :]


def quantized_reference(x, a_counts, d_inv_sqrt, w1, b1, w2, b2):
    """Same math with the kernel's bf16 roundings (A exact, f32 accumulation)."""
    bf = lambda t: t.astype(jnp.bfloat16).astype(jnp.float32)
    d = d_inv_sqrt[:, None]
    xw1 = bf((bf(x) @ bf(w1)) * d)
    h1 = bf(jnp.maximum((a_counts @ xw1) * d + b1[None, :], 0.0))
    xw2 = bf((h1 @ bf(w2)) * d)
    return (a_counts @ xw2) * d + b2[None, :]


if __name__ == "__main__":
    # Module hyper-parameters (consistent with the torch module: use_both doubles C_in)
    in_channels = 8
    out_channels = 32
    use_both = True
    c_in = in_channels * 2 if use_both else in_channels

    num_nodes = 200      # pads to 256 rows -> with 128 tiles the grid is 2 row tiles
    num_edges = 400

    key = jax.random.PRNGKey(0)
    k_x, k_e1, k_e2, k_w1, k_w2, k_b1, k_b2 = jax.random.split(key, 7)

    x = jax.random.normal(k_x, (num_nodes, c_in), jnp.float32)
    src = jax.random.randint(k_e1, (num_edges,), 0, num_nodes)
    dst = jax.random.randint(k_e2, (num_edges,), 0, num_nodes)
    edge_index = jnp.stack([src, dst], axis=0)  # [2, E], like PyG

    w1 = glorot(k_w1, (c_in, out_channels))
    w2 = glorot(k_w2, (out_channels, out_channels))
    # PyG default bias init is zeros; small random biases exercise the add path.
    b1 = 0.05 * jax.random.normal(k_b1, (out_channels,), jnp.float32)
    b2 = 0.05 * jax.random.normal(k_b2, (out_channels,), jnp.float32)

    a_counts, d_inv_sqrt = adjacency_and_norm(edge_index, num_nodes)

    # Force 128-tiles so the multi-step reduction / schedule / accumulator path
    # is exercised even at this small demo size (and both row tiles exist).
    out = gcn_link_predictor(x, a_counts, d_inv_sqrt, w1, b1, w2, b2,
                             tile_m=128, tile_k=128)
    out = jax.block_until_ready(out)
    assert out.shape == (num_nodes, out_channels)

    a_hat = d_inv_sqrt[:, None] * a_counts * d_inv_sqrt[None, :]
    with jax.default_matmul_precision("highest"):
        ref_q = quantized_reference(x, a_counts, d_inv_sqrt, w1, b1, w2, b2)
        ref_f32 = reference_forward(x, a_hat, w1, b1, w2, b2)
        ref_q = jax.block_until_ready(ref_q)
        ref_f32 = jax.block_until_ready(ref_f32)

    # Tight check against a reference applying the same bf16 roundings.
    err_q = float(jnp.max(jnp.abs(out - ref_q)))
    assert jnp.allclose(out, ref_q, atol=1e-2, rtol=1e-2), err_q
    # Loose sanity check vs. the pure-f32 reference (bf16 quantization noise only;
    # the adjacency itself is now exact int8, so this is tighter than before).
    err_f = float(jnp.max(jnp.abs(out - ref_f32)))
    assert jnp.allclose(out, ref_f32, atol=1e-1, rtol=1e-1), err_f

    print("KERNEL_OK")
</pallas_src>

<mosaic_0001>
module attributes {stable_mosaic.version = 11 : i64} {
  func.func @_project_kernel(%arg0: i32, %arg1: memref<256x128xbf16, #tpu.memory_space<vmem>>, %arg2: memref<128x128xbf16, #tpu.memory_space<vmem>>, %arg3: memref<256x1xf32, #tpu.memory_space<vmem>>, %arg4: memref<256x128xbf16, #tpu.memory_space<vmem>>) attributes {dimension_semantics = [#tpu.dimension_semantics<parallel>], iteration_bounds = array<i64: 1>, scalar_prefetch = 0 : i64, scratch_operands = 0 : i64, tpu.core_type = #tpu.core_type<tc>, window_params = [{transform_indices = @transform_0, window_bounds = array<i64: 256, 128>}, {pipeline_mode = #tpu.pipeline_mode<synchronous>, transform_indices = @transform_1, window_bounds = array<i64: 128, 128>}, {transform_indices = @transform_2, window_bounds = array<i64: 256, 1>}, {transform_indices = @transform_3, window_bounds = array<i64: 256, 128>}]} {
    %c0 = arith.constant 0 : index
    %c0_0 = arith.constant 0 : index
    %0 = vector.load %arg1[%c0, %c0_0] : memref<256x128xbf16, #tpu.memory_space<vmem>>, vector<256x128xbf16>
    %c0_1 = arith.constant 0 : index
    %c0_2 = arith.constant 0 : index
    %1 = vector.load %arg2[%c0_1, %c0_2] : memref<128x128xbf16, #tpu.memory_space<vmem>>, vector<128x128xbf16>
    %cst = arith.constant dense<0.000000e+00> : vector<256x128xf32>
    %2 = tpu.matmul %0, %1, %cst {dimension_numbers = #tpu.dot_dimension_numbers<[1], [0], [0], [1], [0, 0, 1, 1], [], []>} : vector<256x128xbf16>, vector<128x128xbf16>, vector<256x128xf32> -> vector<256x128xf32>
    %c0_3 = arith.constant 0 : index
    %c0_4 = arith.constant 0 : index
    %3 = vector.load %arg3[%c0_3, %c0_4] : memref<256x1xf32, #tpu.memory_space<vmem>>, vector<256x1xf32>
    %4 = vector.broadcast %3 : vector<256x1xf32> to vector<256x128xf32>
    %5 = arith.mulf %2, %4 : vector<256x128xf32>
    %6 = arith.truncf %5 : vector<256x128xf32> to vector<256x128xbf16>
    %c0_5 = arith.constant 0 : index
    %c0_6 = arith.constant 0 : index
    %7 = vector.load %arg4[%c0_5, %c0_6] : memref<256x128xbf16, #tpu.memory_space<vmem>>, vector<256x128xbf16>
    tpu.vector_store %arg4[%c0_5, %c0_6], %6 {strides = array<i32>} : memref<256x128xbf16, #tpu.memory_space<vmem>>, vector<256x128xbf16>,
    return
  }
  func.func @transform_0(%arg0: i32) -> (i32, i32) {
    %c0_i32 = arith.constant 0 : i32
    %c0_i32_0 = arith.constant 0 : i32
    return %arg0, %c0_i32 : i32, i32
  }
  func.func @transform_1(%arg0: i32) -> (i32, i32) {
    %c0_i32 = arith.constant 0 : i32
    %c0_i32_0 = arith.constant 0 : i32
    %c0_i32_1 = arith.constant 0 : i32
    return %c0_i32, %c0_i32_0 : i32, i32
  }
  func.func @transform_2(%arg0: i32) -> (i32, i32) {
    %c0_i32 = arith.constant 0 : i32
    %c0_i32_0 = arith.constant 0 : i32
    return %arg0, %c0_i32 : i32, i32
  }
  func.func @transform_3(%arg0: i32) -> (i32, i32) {
    %c0_i32 = arith.constant 0 : i32
    %c0_i32_0 = arith.constant 0 : i32
    return %arg0, %c0_i32 : i32, i32
  }
}

</mosaic_0001>

<bundles_post_ra>
// kernel: tpu_custom_call.1
= control target key start
LH: loop header
LB: loop body
LE: loop exit
PB: predicated region body
PF: predicated region fallthrough
CT: control target
= control target key end

     0   :  { %v874_v3 = vmov 0   ;;  %s1102_s0 = inlined_call_operand.vmem [shape: bf16[256,128], index: 0, kind: input, shape index: {}]   ;;  %s1103_s1 = inlined_call_operand.vmem [shape: bf16[128,128], index: 1, kind: input, shape index: {}]   ;;  %s1104_s2 = inlined_call_operand.vmem [shape: f32[256,1], index: 2, kind: input, shape index: {}]   ;;  %s1105_s3 = inlined_call_operand.hbm [shape: bf16[256,128], index: 3, kind: output, shape index: {}]  }
   0x1   :  { %v300_v0 = vld [vmem:[%s1104_s2 + $0x20] sm:$0xff]  ;;  %v298_v1 = vld [vmem:[%s1104_s2 + $0x10] sm:$0xff]  ;;  %847 = vset.pattern.permute.xlu2 %v874_v3  ;;  %846 = vset.pattern.permute.xlu1 %v874_v3  ;;  %v721_v4 = vld [vmem:[%s1103_s1 + $0x38] sm:$0xff] }
   0x2   :  { %v296_v2 = vld [vmem:[%s1104_s2] sm:$0xff]  ;;  %845 = vset.pattern.permute.xlu0 %v874_v3  ;;  %350 = vperm.xlu2 %847, %v300_v0   ;;  %v720_v5 = vld [vmem:[%s1103_s1 + $0x30] sm:$0xff]  ;;  %v301_v6 = vld [vmem:[%s1104_s2 + $0x28] sm:$0xff] }
   0x3   :  { %340 = vperm.xlu1 %846, %v298_v1   ;;  %330 = vperm.xlu0 %845, %v296_v2   ;;  %v299_v7 = vld [vmem:[%s1104_s2 + $0x18] sm:$0xff]  ;;  %v297_v8 = vld [vmem:[%s1104_s2 + $0x8] sm:$0xff] }
   0x4   :  { %207 = vmatpush.bf16.msra.mxu0 %v721_v4  ;;  %817 = vmatpush.bf16.msra.mxu1 %v721_v4  ;;  %v719_v9 = vld [vmem:[%s1103_s1 + $0x28] sm:$0xff] }
   0x5   :  { %818 = vmatpush.bf16.msra.mxu2 %v721_v4  ;;  %819 = vmatpush.bf16.msra.mxu3 %v721_v4 }
   0x8   :  { %208 = vmatpush.bf16.msra.mxu0 %v720_v5  ;;  %820 = vmatpush.bf16.msra.mxu1 %v720_v5 }
   0x9   :  { %821 = vmatpush.bf16.msra.mxu2 %v720_v5  ;;  %822 = vmatpush.bf16.msra.mxu3 %v720_v5 }
   0xa   :  { %8 = vsyncpa [#allocation3], 0  ;;  %355 = vperm.xlu2 %847, %v301_v6   ;;  %v718_v10 = vld [vmem:[%s1103_s1 + $0x20] sm:$0xff]  ;;  %v303_v12 = vld [vmem:[%s1104_s2 + $0x38] sm:$0xff]  ;;  %s590_s15 = sshll.u32 %s1105_s3, 4  ;;  %s876_s16 = smov 64   ;;  %s591_s15 = int_to_ptr.hbm [resolvable:$true] %s590_s15 }
   0xb   :  { %345 = vperm.xlu1 %846, %v299_v7   ;;  %335 = vperm.xlu0 %845, %v297_v8   ;;  %v304_v11 = vld [vmem:[%s1104_s2 + $0x40] sm:$0xff]  ;;  %v302_v13 = vld [vmem:[%s1104_s2 + $0x30] sm:$0xff]  ;;  %v717_v14 = vld [vmem:[%s1103_s1 + $0x18] sm:$0xff]  ;;  %s877_s17 = smov 4  }
   0xc   :  { %209 = vmatpush.bf16.msra.mxu0 %v719_v9  ;;  %823 = vmatpush.bf16.msra.mxu1 %v719_v9  ;;  %v716_v15 = vld [vmem:[%s1103_s1 + $0x10] sm:$0xff]  ;;  %v307_v16 = vld [vmem:[%s1104_s2 + $0x58] sm:$0xff]  ;;  %v305_v18 = vld [vmem:[%s1104_s2 + $0x48] sm:$0xff] }
   0xd   :  { %824 = vmatpush.bf16.msra.mxu2 %v719_v9  ;;  %825 = vmatpush.bf16.msra.mxu3 %v719_v9  ;;  %v306_v17 = vld [vmem:[%s1104_s2 + $0x50] sm:$0xff]  ;;  %v715_v19 = vld [vmem:[%s1103_s1 + $0x8] sm:$0xff]  ;;  %v714_v20 = vld [vmem:[%s1103_s1] sm:$0xff] }
   0xe   :  { %v310_v21 = vld [vmem:[%s1104_s2 + $0x70] sm:$0xff]  ;;  %v309_v22 = vld [vmem:[%s1104_s2 + $0x68] sm:$0xff]  ;;  %v308_v23 = vld [vmem:[%s1104_s2 + $0x60] sm:$0xff] }
   0xf   :  { %v698_v24 = vld [vmem:[%s1102_s0] sm:$0xff]  ;;  %v313_v28 = vld [vmem:[%s1104_s2 + $0x88] sm:$0xff]  ;;  %v311_v30 = vld [vmem:[%s1104_s2 + $0x78] sm:$0xff] }
  0x10   :  { %210 = vmatpush.bf16.msra.mxu0 %v718_v10  ;;  %826 = vmatpush.bf16.msra.mxu1 %v718_v10  ;;  %v702_v25 = vld [vmem:[%s1102_s0 + $0x20] sm:$0xff]  ;;  %v315_v32 = vld [vmem:[%s1104_s2 + $0x98] sm:$0xff]  ;;  %v314_v33 = vld [vmem:[%s1104_s2 + $0x90] sm:$0xff] }
  0x11   :  { %827 = vmatpush.bf16.msra.mxu2 %v718_v10  ;;  %828 = vmatpush.bf16.msra.mxu3 %v718_v10  ;;  %v706_v26 = vld [vmem:[%s1102_s0 + $0x40] sm:$0xff]  ;;  %v699_v34 = vld [vmem:[%s1102_s0 + $0x8] sm:$0xff]  ;;  %v319_v38 = vld [vmem:[%s1104_s2 + $0xb8] sm:$0xff] }
  0x12   :  { %370 = vperm.xlu2 %847, %v304_v11   ;;  %v710_v27 = vld [vmem:[%s1102_s0 + $0x60] sm:$0xff]  ;;  %v703_v35 = vld [vmem:[%s1102_s0 + $0x28] sm:$0xff]  ;;  %v318_v39 = vld [vmem:[%s1104_s2 + $0xb0] sm:$0xff] }
  0x13   :  { %365 = vperm.xlu1 %846, %v303_v12   ;;  %360 = vperm.xlu0 %845, %v302_v13   ;;  %v312_v29 = vld [vmem:[%s1104_s2 + $0x80] sm:$0xff]  ;;  %v707_v36 = vld [vmem:[%s1102_s0 + $0x48] sm:$0xff]  ;;  %v322_v41 = vld [vmem:[%s1104_s2 + $0xd0] sm:$0xff] }
  0x14   :  { %211 = vmatpush.bf16.msra.mxu0 %v717_v14  ;;  %829 = vmatpush.bf16.msra.mxu1 %v717_v14  ;;  %v316_v31 = vld [vmem:[%s1104_s2 + $0xa0] sm:$0xff]  ;;  %v711_v37 = vld [vmem:[%s1102_s0 + $0x68] sm:$0xff]  ;;  %v700_v44 = vld [vmem:[%s1102_s0 + $0x10] sm:$0xff] }
  0x15   :  { %830 = vmatpush.bf16.msra.mxu2 %v717_v14  ;;  %831 = vmatpush.bf16.msra.mxu3 %v717_v14  ;;  %v317_v40 = vld [vmem:[%s1104_s2 + $0xa8] sm:$0xff]  ;;  %v320_v43 = vld [vmem:[%s1104_s2 + $0xc0] sm:$0xff]  ;;  %v704_v45 = vld [vmem:[%s1102_s0 + $0x30] sm:$0xff] }
  0x16   :  { %v321_v42 = vld [vmem:[%s1104_s2 + $0xc8] sm:$0xff]  ;;  %v708_v46 = vld [vmem:[%s1102_s0 + $0x50] sm:$0xff]  ;;  %v324_v49 = vld [vmem:[%s1104_s2 + $0xe0] sm:$0xff] }
  0x17   :  { %v712_v47 = vld [vmem:[%s1102_s0 + $0x70] sm:$0xff]  ;;  %v325_v48 = vld [vmem:[%s1104_s2 + $0xe8] sm:$0xff]  ;;  %v323_v50 = vld [vmem:[%s1104_s2 + $0xd8] sm:$0xff] }
  0x18   :  { %212 = vmatpush.bf16.msra.mxu0 %v716_v15  ;;  %832 = vmatpush.bf16.msra.mxu1 %v716_v15  ;;  %v327_v51 = vld [vmem:[%s1104_s2 + $0xf8] sm:$0xff]  ;;  %v326_v52 = vld [vmem:[%s1104_s2 + $0xf0] sm:$0xff] }
  0x19   :  { %833 = vmatpush.bf16.msra.mxu2 %v716_v15  ;;  %834 = vmatpush.bf16.msra.mxu3 %v716_v15  ;;  %v701_v53 = vld [vmem:[%s1102_s0 + $0x18] sm:$0xff] }
  0x1a   :  { %385 = vperm.xlu2 %847, %v307_v16   ;;  %v705_v54 = vld [vmem:[%s1102_s0 + $0x38] sm:$0xff] }
  0x1b   :  { %380 = vperm.xlu1 %846, %v306_v17   ;;  %375 = vperm.xlu0 %845, %v305_v18   ;;  %v709_v55 = vld [vmem:[%s1102_s0 + $0x58] sm:$0xff] }
  0x1c   :  { %213 = vmatpush.bf16.msra.mxu0 %v715_v19  ;;  %835 = vmatpush.bf16.msra.mxu1 %v715_v19  ;;  %v713_v56 = vld [vmem:[%s1102_s0 + $0x78] sm:$0xff]  ;;  %s875_s0 = smov [#allocation2]  }
  0x1d   :  { %836 = vmatpush.bf16.msra.mxu2 %v715_v19  ;;  %837 = vmatpush.bf16.msra.mxu3 %v715_v19  ;;  %s588_s2 = sshll.u32 %s875_s0, 4  ;;  %s589_s2 = int_to_ptr.vmem [resolvable:$true] %s588_s2 }
  0x20   :  { %214 = vmatpush.bf16.msra.mxu0 %v714_v20  ;;  %838 = vmatpush.bf16.msra.mxu1 %v714_v20 }
  0x21   :  { %839 = vmatpush.bf16.msra.mxu2 %v714_v20  ;;  %840 = vmatpush.bf16.msra.mxu3 %v714_v20 }
  0x22   :  { %400 = vperm.xlu2 %847, %v310_v21  }
  0x23   :  { %395 = vperm.xlu1 %846, %v309_v22   ;;  %390 = vperm.xlu0 %845, %v308_v23  }
  0x24   :  { %215 = vmatmul.bf16.vlgmr.msra.gmra.mxu0 %v698_v24  ;;  %235 = vmatmul.bf16.vlgmr.msra.gmra.mxu1 %v702_v25 }
  0x25   :  { %255 = vmatmul.bf16.vlgmr.msra.gmra.mxu2 %v706_v26  ;;  %275 = vmatmul.bf16.vlgmr.msra.gmra.mxu3 %v710_v27 }
  0x2a   :  { %415 = vperm.xlu2 %847, %v313_v28  }
  0x2b   :  { %410 = vperm.xlu1 %846, %v312_v29   ;;  %405 = vperm.xlu0 %845, %v311_v30  }
  0x32   :  { %430 = vperm.xlu2 %847, %v316_v31  }
  0x33   :  { %425 = vperm.xlu1 %846, %v315_v32   ;;  %420 = vperm.xlu0 %845, %v314_v33  }
  0x34   :  { %220 = vmatmul.bf16.gmra.mxu0 %v699_v34  ;;  %240 = vmatmul.bf16.gmra.mxu1 %v703_v35 }
  0x35   :  { %260 = vmatmul.bf16.gmra.mxu2 %v707_v36  ;;  %280 = vmatmul.bf16.gmra.mxu3 %v711_v37 }
  0x3a   :  { %445 = vperm.xlu2 %847, %v319_v38  }
  0x3b   :  { %440 = vperm.xlu1 %846, %v318_v39   ;;  %435 = vperm.xlu0 %845, %v317_v40  }
  0x42   :  { %460 = vperm.xlu2 %847, %v322_v41  }
  0x43   :  { %455 = vperm.xlu1 %846, %v321_v42   ;;  %450 = vperm.xlu0 %845, %v320_v43  }
  0x44   :  { %225 = vmatmul.bf16.gmra.mxu0 %v700_v44  ;;  %245 = vmatmul.bf16.gmra.mxu1 %v704_v45 }
  0x45   :  { %265 = vmatmul.bf16.gmra.mxu2 %v708_v46  ;;  %285 = vmatmul.bf16.gmra.mxu3 %v712_v47 }
  0x4a   :  { %475 = vperm.xlu2 %847, %v325_v48  }
  0x4b   :  { %470 = vperm.xlu1 %846, %v324_v49   ;;  %465 = vperm.xlu0 %845, %v323_v50  }
  0x53   :  { %485 = vperm.xlu1 %846, %v327_v51   ;;  %480 = vperm.xlu0 %845, %v326_v52  }
  0x54   :  { %230 = vmatmul.bf16.gmra.mxu0 %v701_v53  ;;  %250 = vmatmul.bf16.gmra.mxu1 %v705_v54 }
  0x55   :  { %270 = vmatmul.bf16.gmra.mxu2 %v709_v55  ;;  %290 = vmatmul.bf16.gmra.mxu3 %v713_v56 }
  0x5c   :  { %v1066_v57 = vpop.permute.xlu2 %350 }
  0x64   :  { %v1068_v60 = vpop.permute.xlu2 %355 }
  0x6c   :  { %v371_v63 = vpop.permute.xlu2 %370 }
  0x74   :  { %v386_v2 = vpop.permute.xlu2 %385 }
  0x75   :  { %v341_v58 = vpop.permute.xlu1 %340  ;;  %v331_v59 = vpop.permute.xlu0 %330 }
  0x7c   :  { %v1078_v7 = vpop.permute.xlu2 %400 }
  0x7d   :  { %v346_v61 = vpop.permute.xlu1 %345  ;;  %v336_v62 = vpop.permute.xlu0 %335 }
  0x84   :  { %v416_v10 = vpop.permute.xlu2 %415 }
  0x85   :  { %v1070_v0 = vpop.permute.xlu1 %365  ;;  %v1072_v1 = vpop.permute.xlu0 %360 }
  0x8c   :  { %v1082_v19 = vpop.permute.xlu2 %430 }
  0x8d   :  { %v381_v3 = vpop.permute.xlu1 %380  ;;  %v376_v4 = vpop.permute.xlu0 %375 }
  0x94   :  { %v1086_v35 = vpop.permute.xlu2 %445 }
  0x95   :  { %v1074_v5 = vpop.permute.xlu1 %395  ;;  %v1076_v6 = vpop.permute.xlu0 %390 }
  0x9c   :  { %v461_v52 = vpop.permute.xlu2 %460 }
  0x9d   :  { %v411_v8 = vpop.permute.xlu1 %410  ;;  %v1080_v9 = vpop.permute.xlu0 %405 }
  0xa1   :  { %v216_v11 = vpop.f32.mrf.mxu0  ;;  %v236_v12 = vpop.f32.mrf.mxu1 }
  0xa2   :  { %v488_v20 = vmul.f32 %v331_v59, %v216_v11  ;;  %v496_v21 = vmul.f32 %v371_v63, %v236_v12 }
  0xa5   :  { %v426_v13 = vpop.permute.xlu1 %425  ;;  %v421_v14 = vpop.permute.xlu0 %420 }
  0xa8   :  { %v256_v15 = vpop.f32.mrf.mxu2  ;;  %v276_v16 = vpop.f32.mrf.mxu3 }
  0xa9   :  { %v218_v17 = vpop.f32.mrf.mxu0  ;;  %v238_v18 = vpop.f32.mrf.mxu1  ;;  %v504_v30 = vmul.f32 %v411_v8, %v256_v15 }
  0xaa   :  { %v489_v22 = vmul.f32 %v336_v62, %v218_v17  ;;  %v497_v23 = vmul.f32 %v376_v4, %v238_v18  ;;  %v476_v17 = vpop.permute.xlu2 %475 }
  0xac   :  { %v725_v24 = vpack.c.bf16 %v489_v22, %v488_v20  ;;  %v745_v25 = vpack.c.bf16 %v497_v23, %v496_v21 }
  0xad   :  { %v1084_v26 = vpop.permute.xlu1 %440  ;;  %v436_v27 = vpop.permute.xlu0 %435 }
  0xae   :  { %726 = vst [vmem:[#allocation2] sm:$0xff] %v725_v24  }
  0xaf   :  { %805 = vst [vmem:[#allocation2 + $0x20] sm:$0xff] %v745_v25  }
  0xb0   :  { %v258_v28 = vpop.f32.mrf.mxu2  ;;  %v278_v29 = vpop.f32.mrf.mxu3 }
  0xb1   :  { %v505_v31 = vmul.f32 %v416_v10, %v258_v28  ;;  %v221_v32 = vpop.f32.mrf.mxu0  ;;  %v241_v33 = vpop.f32.mrf.mxu1 }
  0xb2   :  { %v490_v45 = vmul.f32 %v341_v58, %v221_v32  ;;  %v498_v46 = vmul.f32 %v381_v3, %v241_v33 }
  0xb3   :  { %v765_v34 = vpack.c.bf16 %v505_v31, %v504_v30 }
  0xb5   :  { %809 = vst [vmem:[#allocation2 + $0x40] sm:$0xff] %v765_v34   ;;  %v456_v36 = vpop.permute.xlu1 %455  ;;  %v451_v37 = vpop.permute.xlu0 %450 }
  0xb6   :  { %v513_v38 = vmul.f32 %v456_v36, %v278_v29  ;;  %v512_v39 = vmul.f32 %v451_v37, %v276_v16 }
  0xb8   :  { %v785_v40 = vpack.c.bf16 %v513_v38, %v512_v39  ;;  %v261_v41 = vpop.f32.mrf.mxu2  ;;  %v281_v42 = vpop.f32.mrf.mxu3 }
  0xb9   :  { %v223_v43 = vpop.f32.mrf.mxu0  ;;  %v243_v44 = vpop.f32.mrf.mxu1  ;;  %v506_v55 = vmul.f32 %v421_v14, %v261_v41  ;;  %v514_v56 = vmul.f32 %v461_v52, %v281_v42 }
  0xba   :  { %813 = vst [vmem:[#allocation2 + $0x60] sm:$0xff] %v785_v40   ;;  %v491_v47 = vmul.f32 %v346_v61, %v223_v43  ;;  %v499_v48 = vmul.f32 %v386_v2, %v243_v44 }
  0xbc   :  { %v730_v49 = vpack.c.bf16 %v491_v47, %v490_v45  ;;  %v750_v50 = vpack.c.bf16 %v499_v48, %v498_v46 }
  0xbd   :  { %v466_v51 = vpop.permute.xlu0 %465  ;;  %v471_v18 = vpop.permute.xlu1 %470 }
  0xbe   :  { %802 = vst [vmem:[#allocation2 + $0x8] sm:$0xff] %v730_v49  }
  0xbf   :  { %806 = vst [vmem:[#allocation2 + $0x28] sm:$0xff] %v750_v50  }
  0xc0   :  { %v263_v53 = vpop.f32.mrf.mxu2  ;;  %v283_v54 = vpop.f32.mrf.mxu3 }
  0xc1   :  { %v507_v59 = vmul.f32 %v426_v13, %v263_v53  ;;  %v515_v62 = vmul.f32 %v466_v51, %v283_v54  ;;  %v226_v63 = vpop.f32.mrf.mxu0  ;;  %v246_v4 = vpop.f32.mrf.mxu1 }
  0xc2   :  { %v492_v11 = vmul.f32 %v1066_v57, %v226_v63  ;;  %v500_v12 = vmul.f32 %v1076_v6, %v246_v4 }
  0xc3   :  { %v770_v8 = vpack.c.bf16 %v507_v59, %v506_v55  ;;  %v790_v58 = vpack.c.bf16 %v515_v62, %v514_v56 }
  0xc5   :  { %810 = vst [vmem:[#allocation2 + $0x48] sm:$0xff] %v770_v8   ;;  %v486_v37 = vpop.permute.xlu1 %485  ;;  %v481_v38 = vpop.permute.xlu0 %480 }
  0xc6   :  { %814 = vst [vmem:[#allocation2 + $0x68] sm:$0xff] %v790_v58  }
  0xc8   :  { %v266_v61 = vpop.f32.mrf.mxu2  ;;  %v286_v2 = vpop.f32.mrf.mxu3 }
  0xc9   :  { %v228_v3 = vpop.f32.mrf.mxu0  ;;  %v248_v10 = vpop.f32.mrf.mxu1  ;;  %v508_v22 = vmul.f32 %v1082_v19, %v266_v61  ;;  %v516_v23 = vmul.f32 %v471_v18, %v286_v2 }
  0xca   :  { %v493_v15 = vmul.f32 %v1068_v60, %v228_v3  ;;  %v501_v14 = vmul.f32 %v1074_v5, %v248_v10 }
  0xcc   :  { %v735_v13 = vpack.c.bf16 %v493_v15, %v492_v11  ;;  %v755_v16 = vpack.c.bf16 %v501_v14, %v500_v12 }
  0xce   :  { %803 = vst [vmem:[#allocation2 + $0x10] sm:$0xff] %v735_v13  }
  0xcf   :  { %807 = vst [vmem:[#allocation2 + $0x30] sm:$0xff] %v755_v16  }
  0xd0   :  { %v268_v20 = vpop.f32.mrf.mxu2  ;;  %v288_v21 = vpop.f32.mrf.mxu3 }
  0xd1   :  { %v509_v24 = vmul.f32 %v436_v27, %v268_v20  ;;  %v517_v25 = vmul.f32 %v476_v17, %v288_v21  ;;  %v231_v57 = vpop.f32.mrf.mxu0  ;;  %v251_v28 = vpop.f32.mrf.mxu1 }
  0xd2   :  { %v494_v32 = vmul.f32 %v1072_v1, %v231_v57  ;;  %v502_v33 = vmul.f32 %v1078_v7, %v251_v28 }
  0xd3   :  { %v775_v6 = vpack.c.bf16 %v509_v24, %v508_v22  ;;  %v795_v29 = vpack.c.bf16 %v517_v25, %v516_v23 }
  0xd5   :  { %811 = vst [vmem:[#allocation2 + $0x50] sm:$0xff] %v775_v6  }
  0xd6   :  { %815 = vst [vmem:[#allocation2 + $0x70] sm:$0xff] %v795_v29  }
  0xd8   :  { %v271_v60 = vpop.f32.mrf.mxu2  ;;  %v291_v5 = vpop.f32.mrf.mxu3 }
  0xd9   :  { %v233_v30 = vpop.f32.mrf.mxu0  ;;  %v253_v31 = vpop.f32.mrf.mxu1  ;;  %v510_v1 = vmul.f32 %v1084_v26, %v271_v60  ;;  %v518_v7 = vmul.f32 %v481_v38, %v291_v5 }
  0xda   :  { %v495_v34 = vmul.f32 %v1070_v0, %v233_v30  ;;  %v503_v19 = vmul.f32 %v1080_v9, %v253_v31 }
  0xdc   :  { %v740_v27 = vpack.c.bf16 %v495_v34, %v494_v32  ;;  %v760_v36 = vpack.c.bf16 %v503_v19, %v502_v33 }
  0xde   :  { %804 = vst [vmem:[#allocation2 + $0x18] sm:$0xff] %v740_v27  }
  0xdf   :  { %808 = vst [vmem:[#allocation2 + $0x38] sm:$0xff] %v760_v36  }
  0xe0   :  { %v273_v39 = vpop.f32.mrf.mxu2  ;;  %v293_v40 = vpop.f32.mrf.mxu3 }
  0xe1   :  { %v511_v0 = vmul.f32 %v1086_v35, %v273_v39  ;;  %v519_v9 = vmul.f32 %v486_v37, %v293_v40 }
  0xe3   :  { %v780_v41 = vpack.c.bf16 %v511_v0, %v510_v1  ;;  %v800_v42 = vpack.c.bf16 %v519_v9, %v518_v7 }
  0xe5   :  { %812 = vst [vmem:[#allocation2 + $0x58] sm:$0xff] %v780_v41  }
  0xe6   :  { %816 = vst [vmem:[#allocation2 + $0x78] sm:$0xff] %v800_v42  }
  0xe7   :  { %596 = dma.vmem_to_hbm [thread:$0]  %s589_s2, 2048, %s591_s15, [#allocation3], %s876_s16, %s876_s16, %s877_s17  }
  0xe8   :  { %872 = dma.done.wait [#allocation3], 2048  }
  0xe9   :  { %873 = vsyncadd [#allocation3], 4294965248 }
  0xea   :  { %601 = vsyncpa [#allocation3], 1 }

</bundles_post_ra>
